<compile_context>
chip_gen: v7x
topology: tpu7x:2x2x1
jax: 0.10.0
libtpu: 0.0.40
codegen_flags: <defaults>
</compile_context>

<pallas_src>
import math
import functools

import jax
import jax.numpy as jnp
from jax.experimental import pallas as pl
from jax.experimental.pallas import tpu as pltpu

_INV_SQRT2 = 1.0 / math.sqrt(2.0)


def _round_up(x, m):
    return (x + m - 1) // m * m


def _layernorm(z, gamma, beta, eps, inv_d, mask):
    """LayerNorm over the last axis.  Padded feature columns of z are zero, so plain
    sums divided by the *real* feature count give correct statistics; the mask keeps
    padded columns out of the variance and (with zero gamma/beta padding) forces them
    back to zero on output."""
    mean = jnp.sum(z, axis=-1, keepdims=True) * inv_d
    xc = z - mean
    if mask is not None:
        xc = xc * mask
    var = jnp.sum(xc * xc, axis=-1, keepdims=True) * inv_d
    inv = jax.lax.rsqrt(var + eps)
    return xc * inv * gamma + beta


def feedforward_kernel(x_ref, w1_ref, b1_ref, w2_ref, b2_ref,
                       g1_ref, be1_ref, g2_ref, be2_ref,
                       out_ref, acc_ref, xbf_ref, *, eps1, eps2, d_valid, inv_d):
    k = pl.program_id(1)

    @pl.when(k == 0)
    def _init():
        # fold the second bias into the accumulator; stage x once as bf16 for the MXU
        acc_ref[...] = jnp.broadcast_to(b2_ref[...], acc_ref.shape)
        xbf_ref[...] = x_ref[...].astype(jnp.bfloat16)

    # ---- streamed hidden chunk:
    #      acc += gelu(x @ W1^T[:, chunk] + b1[chunk]) @ W2^T[chunk, :]
    h = jnp.dot(xbf_ref[...], w1_ref[...], preferred_element_type=jnp.float32)
    h = h + b1_ref[...]
    # exact erf-GELU (matches the PyTorch module)
    h = h * (0.5 * (1.0 + jax.lax.erf(h * _INV_SQRT2)))
    acc_ref[...] += jnp.dot(h.astype(jnp.bfloat16), w2_ref[...],
                            preferred_element_type=jnp.float32)

    # ---- epilogue on the last hidden chunk: residuals + the two LayerNorms (f32)
    @pl.when(k == pl.num_programs(1) - 1)
    def _finalize():
        xf = x_ref[...].astype(jnp.float32)
        y = acc_ref[...]                       # already includes b2

        tm, d_pad = out_ref.shape
        if d_valid != d_pad:                   # static: only mask if D was padded
            col = jax.lax.broadcasted_iota(jnp.int32, (tm, d_pad), 1)
            mask = (col < d_valid).astype(jnp.float32)
        else:
            mask = None

        # dropout is identity at inference time
        # LayerNorm1(l2(...) + input)
        z = _layernorm(y + xf, g1_ref[...], be1_ref[...], eps1, inv_d, mask)
        # ContraNorm(scale=0.0, ...) degenerates to its internal LayerNorm (eps=1e-6)
        z = _layernorm(z + xf, g2_ref[...], be2_ref[...], eps2, inv_d, mask)
        out_ref[...] = z.astype(out_ref.dtype)


def feedforward(x, params, *, eps1=1e-12, eps2=1e-6, tm=256, tk=512):
    """x: (B, S, D) float32. Returns (B, S, D)."""
    B, S, D = x.shape
    M = B * S
    inner = params["w1"].shape[0]

    # ---- lane-dense padding & tile selection -------------------------------------
    d_pad = _round_up(D, 128)
    tk = _round_up(min(tk, _round_up(inner, 128)), 128)
    inner_pad = _round_up(inner, tk)
    tm = _round_up(min(tm, _round_up(M, 8)), 8)
    m_pad = _round_up(M, tm)

    f32 = jnp.float32
    xf = jnp.pad(x.reshape(M, D).astype(f32), ((0, m_pad - M), (0, d_pad - D)))

    def pad2(a, r, c):
        return jnp.pad(a, ((0, r - a.shape[0]), (0, c - a.shape[1])))

    def pad_row(v, n):
        return jnp.pad(v.astype(f32), (0, n - v.shape[0])).reshape(1, n)

    # Weights pre-cast to bf16 (halves HBM/VMEM traffic, feeds the MXU natively);
    # biases / LayerNorm params stay f32.
    w1t = pad2(params["w1"].T.astype(f32), d_pad, inner_pad).astype(jnp.bfloat16)
    w2t = pad2(params["w2"].T.astype(f32), inner_pad, d_pad).astype(jnp.bfloat16)
    b1 = pad_row(params["b1"], inner_pad)
    b2 = pad_row(params["b2"], d_pad)
    g1 = pad_row(params["gamma1"], d_pad)
    be1 = pad_row(params["beta1"], d_pad)
    g2 = pad_row(params["gamma2"], d_pad)
    be2 = pad_row(params["beta2"], d_pad)

    kernel = functools.partial(feedforward_kernel, eps1=eps1, eps2=eps2,
                               d_valid=D, inv_d=1.0 / D)

    out_itemsize = jnp.dtype(x.dtype).itemsize
    # double-buffered pipeline tiles + f32 accumulator / bf16 x scratch, with headroom
    est = 2 * (tm * d_pad * 4            # x tile (f32)
               + d_pad * tk * 2          # W1^T chunk (bf16)
               + tk * d_pad * 2          # W2^T chunk (bf16)
               + 8 * tk * 4              # b1 chunk (sublane padded)
               + 5 * 8 * d_pad * 4       # b2 / gamma / beta rows
               + tm * d_pad * out_itemsize)
    est += tm * d_pad * 4                # f32 accumulator scratch
    est += tm * d_pad * 2                # bf16 staged-x scratch
    vmem_limit = int(min(max(2 * est, 16 << 20), 64 << 20))

    grid = (m_pad // tm, inner_pad // tk)
    row_spec = pl.BlockSpec((1, d_pad), lambda i, k: (0, 0))

    cost = pl.CostEstimate(
        flops=int(4 * m_pad * d_pad * inner_pad),
        transcendentals=int(m_pad * inner_pad),
        bytes_accessed=int(xf.size * 4 + w1t.size * 2 + w2t.size * 2
                           + (b1.size + b2.size + 4 * d_pad) * 4
                           + m_pad * d_pad * out_itemsize),
    )

    out = pl.pallas_call(
        kernel,
        out_shape=jax.ShapeDtypeStruct((m_pad, d_pad), x.dtype),
        grid_spec=pltpu.PrefetchScalarGridSpec(
            num_scalar_prefetch=0,
            grid=grid,
            in_specs=[
                pl.BlockSpec((tm, d_pad), lambda i, k: (i, 0)),      # x tile
                pl.BlockSpec((d_pad, tk), lambda i, k: (0, k)),      # W1^T chunk
                pl.BlockSpec((1, tk), lambda i, k: (0, k)),          # b1 chunk
                pl.BlockSpec((tk, d_pad), lambda i, k: (k, 0)),      # W2^T chunk
                row_spec,                                            # b2
                row_spec,                                            # gamma1
                row_spec,                                            # beta1
                row_spec,                                            # gamma2
                row_spec,                                            # beta2
            ],
            out_specs=pl.BlockSpec((tm, d_pad), lambda i, k: (i, 0)),
            scratch_shapes=[pltpu.VMEM((tm, d_pad), jnp.float32),    # f32 accumulator
                            pltpu.VMEM((tm, d_pad), jnp.bfloat16)],  # staged bf16 x
        ),
        compiler_params=pltpu.CompilerParams(
            dimension_semantics=("parallel", "arbitrary"),
            vmem_limit_bytes=vmem_limit),
        cost_estimate=cost,
    )(xf, w1t, b1, w2t, b2, g1, be1, g2, be2)

    return out[:M, :D].reshape(B, S, D)


def feedforward_reference(x, params, *, eps1=1e-12, eps2=1e-6):
    """Pure-JAX f32 reference with the exact module semantics (eval mode)."""
    def ln(z, g, b, eps):
        m = jnp.mean(z, axis=-1, keepdims=True)
        v = jnp.mean((z - m) ** 2, axis=-1, keepdims=True)
        return (z - m) * jax.lax.rsqrt(v + eps) * g + b

    h = x @ params["w1"].T + params["b1"]
    h = h * 0.5 * (1.0 + jax.lax.erf(h / math.sqrt(2.0)))
    y = h @ params["w2"].T + params["b2"]
    z = ln(y + x, params["gamma1"], params["beta1"], eps1)
    z = ln(z + x, params["gamma2"], params["beta2"], eps2)
    return z


def init_params(key, size, inner_size):
    """Deterministic parameter init mirroring nn.Linear / nn.LayerNorm shapes."""
    k1, k2, k3, k4 = jax.random.split(key, 4)
    bound1 = 1.0 / math.sqrt(size)
    bound2 = 1.0 / math.sqrt(inner_size)
    return {
        "w1": jax.random.uniform(k1, (inner_size, size), jnp.float32, -bound1, bound1),
        "b1": jax.random.uniform(k2, (inner_size,), jnp.float32, -bound1, bound1),
        "w2": jax.random.uniform(k3, (size, inner_size), jnp.float32, -bound2, bound2),
        "b2": jax.random.uniform(k4, (size,), jnp.float32, -bound2, bound2),
        "gamma1": jnp.ones((size,), jnp.float32),
        "beta1": jnp.zeros((size,), jnp.float32),
        "gamma2": jnp.ones((size,), jnp.float32),
        "beta2": jnp.zeros((size,), jnp.float32),
    }


if __name__ == "__main__":
    # Small shapes consistent with the module: (batch, seq, size)
    batch, seq, size, inner_size = 2, 8, 32, 64

    key = jax.random.PRNGKey(0)
    kx, kp = jax.random.split(key)
    x = jax.random.normal(kx, (batch, seq, size), jnp.float32)
    params = init_params(kp, size, inner_size)

    out = feedforward(x, params)
    jax.block_until_ready(out)
    assert out.shape == (batch, seq, size)

    # sanity check vs. a pure-f32 reference (kernel uses bf16 MXU operands)
    ref = feedforward_reference(x, params)
    err = float(jnp.max(jnp.abs(out - ref)))
    assert err < 5e-2, f"max abs error {err}"
    print("KERNEL_OK")
</pallas_src>

<mosaic_0001>
module attributes {stable_mosaic.version = 11 : i64} {
  func.func @feedforward_kernel(%arg0: i32, %arg1: i32, %arg2: memref<16x128xf32, #tpu.memory_space<vmem>>, %arg3: memref<128x128xbf16, #tpu.memory_space<vmem>>, %arg4: memref<1x128xf32, #tpu.memory_space<vmem>>, %arg5: memref<128x128xbf16, #tpu.memory_space<vmem>>, %arg6: memref<1x128xf32, #tpu.memory_space<vmem>>, %arg7: memref<1x128xf32, #tpu.memory_space<vmem>>, %arg8: memref<1x128xf32, #tpu.memory_space<vmem>>, %arg9: memref<1x128xf32, #tpu.memory_space<vmem>>, %arg10: memref<1x128xf32, #tpu.memory_space<vmem>>, %arg11: memref<16x128xf32, #tpu.memory_space<vmem>>, %arg12: memref<16x128xf32, #tpu.memory_space<vmem>>, %arg13: memref<16x128xbf16, #tpu.memory_space<vmem>>) attributes {dimension_semantics = [#tpu.dimension_semantics<parallel>, #tpu.dimension_semantics<arbitrary>], iteration_bounds = array<i64: 1, 1>, scalar_prefetch = 0 : i64, scratch_operands = 2 : i64, tpu.core_type = #tpu.core_type<tc>, window_params = [{transform_indices = @transform_0, window_bounds = array<i64: 16, 128>}, {transform_indices = @transform_1, window_bounds = array<i64: 128, 128>}, {transform_indices = @transform_2, window_bounds = array<i64: 1, 128>}, {transform_indices = @transform_3, window_bounds = array<i64: 128, 128>}, {pipeline_mode = #tpu.pipeline_mode<synchronous>, transform_indices = @transform_4, window_bounds = array<i64: 1, 128>}, {pipeline_mode = #tpu.pipeline_mode<synchronous>, transform_indices = @transform_5, window_bounds = array<i64: 1, 128>}, {pipeline_mode = #tpu.pipeline_mode<synchronous>, transform_indices = @transform_6, window_bounds = array<i64: 1, 128>}, {pipeline_mode = #tpu.pipeline_mode<synchronous>, transform_indices = @transform_7, window_bounds = array<i64: 1, 128>}, {pipeline_mode = #tpu.pipeline_mode<synchronous>, transform_indices = @transform_8, window_bounds = array<i64: 1, 128>}, {transform_indices = @transform_9, window_bounds = array<i64: 16, 128>}]} {
    %c0_i32 = arith.constant 0 : i32
    %0 = arith.cmpi eq, %arg1, %c0_i32 : i32
    %1 = arith.extui %0 : i1 to i32
    %c0_i32_0 = arith.constant 0 : i32
    %2 = arith.cmpi ne, %1, %c0_i32_0 : i32
    scf.if %2 {
      %c0_18 = arith.constant 0 : index
      %c0_19 = arith.constant 0 : index
      %26 = vector.load %arg6[%c0_18, %c0_19] : memref<1x128xf32, #tpu.memory_space<vmem>>, vector<1x128xf32>
      %27 = vector.shape_cast %26 : vector<1x128xf32> to vector<1x128xf32>
      %28 = vector.broadcast %27 : vector<1x128xf32> to vector<16x128xf32>
      %c0_20 = arith.constant 0 : index
      %c0_21 = arith.constant 0 : index
      %29 = vector.load %arg12[%c0_20, %c0_21] : memref<16x128xf32, #tpu.memory_space<vmem>>, vector<16x128xf32>
      tpu.vector_store %arg12[%c0_20, %c0_21], %28 {strides = array<i32>} : memref<16x128xf32, #tpu.memory_space<vmem>>, vector<16x128xf32>,
      %c0_22 = arith.constant 0 : index
      %c0_23 = arith.constant 0 : index
      %30 = vector.load %arg2[%c0_22, %c0_23] : memref<16x128xf32, #tpu.memory_space<vmem>>, vector<16x128xf32>
      %31 = arith.truncf %30 : vector<16x128xf32> to vector<16x128xbf16>
      %c0_24 = arith.constant 0 : index
      %c0_25 = arith.constant 0 : index
      %32 = vector.load %arg13[%c0_24, %c0_25] : memref<16x128xbf16, #tpu.memory_space<vmem>>, vector<16x128xbf16>
      tpu.vector_store %arg13[%c0_24, %c0_25], %31 {strides = array<i32>} : memref<16x128xbf16, #tpu.memory_space<vmem>>, vector<16x128xbf16>,
    } else {
    }
    %c0 = arith.constant 0 : index
    %c0_1 = arith.constant 0 : index
    %3 = vector.load %arg13[%c0, %c0_1] : memref<16x128xbf16, #tpu.memory_space<vmem>>, vector<16x128xbf16>
    %c0_2 = arith.constant 0 : index
    %c0_3 = arith.constant 0 : index
    %4 = vector.load %arg3[%c0_2, %c0_3] : memref<128x128xbf16, #tpu.memory_space<vmem>>, vector<128x128xbf16>
    %cst = arith.constant dense<0.000000e+00> : vector<16x128xf32>
    %5 = tpu.matmul %3, %4, %cst {dimension_numbers = #tpu.dot_dimension_numbers<[1], [0], [0], [1], [0, 0, 1, 1], [], []>} : vector<16x128xbf16>, vector<128x128xbf16>, vector<16x128xf32> -> vector<16x128xf32>
    %c0_4 = arith.constant 0 : index
    %c0_5 = arith.constant 0 : index
    %6 = vector.load %arg4[%c0_4, %c0_5] : memref<1x128xf32, #tpu.memory_space<vmem>>, vector<1x128xf32>
    %7 = vector.broadcast %6 : vector<1x128xf32> to vector<16x128xf32>
    %8 = arith.addf %5, %7 : vector<16x128xf32>
    %cst_6 = arith.constant 0.707106769 : f32
    %9 = vector.broadcast %cst_6 : f32 to vector<16x128xf32>
    %10 = arith.mulf %8, %9 : vector<16x128xf32>
    %11 = math.erf %10 : vector<16x128xf32>
    %cst_7 = arith.constant 1.000000e+00 : f32
    %12 = vector.broadcast %cst_7 : f32 to vector<16x128xf32>
    %13 = arith.addf %12, %11 : vector<16x128xf32>
    %cst_8 = arith.constant 5.000000e-01 : f32
    %14 = vector.broadcast %cst_8 : f32 to vector<16x128xf32>
    %15 = arith.mulf %14, %13 : vector<16x128xf32>
    %16 = arith.mulf %8, %15 : vector<16x128xf32>
    %c0_9 = arith.constant 0 : index
    %c0_10 = arith.constant 0 : index
    %17 = vector.load %arg12[%c0_9, %c0_10] : memref<16x128xf32, #tpu.memory_space<vmem>>, vector<16x128xf32>
    %18 = arith.truncf %16 : vector<16x128xf32> to vector<16x128xbf16>
    %c0_11 = arith.constant 0 : index
    %c0_12 = arith.constant 0 : index
    %19 = vector.load %arg5[%c0_11, %c0_12] : memref<128x128xbf16, #tpu.memory_space<vmem>>, vector<128x128xbf16>
    %cst_13 = arith.constant dense<0.000000e+00> : vector<16x128xf32>
    %20 = tpu.matmul %18, %19, %cst_13 {dimension_numbers = #tpu.dot_dimension_numbers<[1], [0], [0], [1], [0, 0, 1, 1], [], []>} : vector<16x128xbf16>, vector<128x128xbf16>, vector<16x128xf32> -> vector<16x128xf32>
    %21 = arith.addf %17, %20 : vector<16x128xf32>
    %c0_14 = arith.constant 0 : index
    %c0_15 = arith.constant 0 : index
    %22 = vector.load %arg12[%c0_14, %c0_15] : memref<16x128xf32, #tpu.memory_space<vmem>>, vector<16x128xf32>
    tpu.vector_store %arg12[%c0_14, %c0_15], %21 {strides = array<i32>} : memref<16x128xf32, #tpu.memory_space<vmem>>, vector<16x128xf32>,
    %c0_i32_16 = arith.constant 0 : i32
    %23 = arith.cmpi eq, %arg1, %c0_i32_16 : i32
    %24 = arith.extui %23 : i1 to i32
    %c0_i32_17 = arith.constant 0 : i32
    %25 = arith.cmpi ne, %24, %c0_i32_17 : i32
    scf.if %25 {
      %c0_18 = arith.constant 0 : index
      %c0_19 = arith.constant 0 : index
      %26 = vector.load %arg2[%c0_18, %c0_19] : memref<16x128xf32, #tpu.memory_space<vmem>>, vector<16x128xf32>
      %c0_20 = arith.constant 0 : index
      %c0_21 = arith.constant 0 : index
      %27 = vector.load %arg12[%c0_20, %c0_21] : memref<16x128xf32, #tpu.memory_space<vmem>>, vector<16x128xf32>
      %28 = tpu.iota {dimensions = array<i32: 1>} : vector<16x128xi32>
      %c32_i32 = arith.constant 32 : i32
      %29 = vector.broadcast %c32_i32 : i32 to vector<16x128xi32>
      %30 = arith.cmpi slt, %28, %29 : vector<16x128xi32>
      %31 = arith.extui %30 : vector<16x128xi1> to vector<16x128xi32>
      %32 = arith.sitofp %31 : vector<16x128xi32> to vector<16x128xf32>
      %33 = arith.addf %27, %26 : vector<16x128xf32>
      %c0_22 = arith.constant 0 : index
      %c0_23 = arith.constant 0 : index
      %34 = vector.load %arg7[%c0_22, %c0_23] : memref<1x128xf32, #tpu.memory_space<vmem>>, vector<1x128xf32>
      %c0_24 = arith.constant 0 : index
      %c0_25 = arith.constant 0 : index
      %35 = vector.load %arg8[%c0_24, %c0_25] : memref<1x128xf32, #tpu.memory_space<vmem>>, vector<1x128xf32>
      %cst_26 = arith.constant dense<0.000000e+00> : vector<16xf32>
      %36 = vector.multi_reduction <add>, %33, %cst_26 [1] : vector<16x128xf32> to vector<16xf32>
      %37 = vector.shape_cast %36 : vector<16xf32> to vector<16x1xf32>
      %cst_27 = arith.constant 3.125000e-02 : f32
      %38 = vector.broadcast %cst_27 : f32 to vector<16x1xf32>
      %39 = arith.mulf %37, %38 : vector<16x1xf32>
      %40 = vector.broadcast %39 : vector<16x1xf32> to vector<16x128xf32>
      %41 = arith.subf %33, %40 : vector<16x128xf32>
      %42 = arith.mulf %41, %32 : vector<16x128xf32>
      %43 = arith.mulf %42, %42 : vector<16x128xf32>
      %cst_28 = arith.constant dense<0.000000e+00> : vector<16xf32>
      %44 = vector.multi_reduction <add>, %43, %cst_28 [1] : vector<16x128xf32> to vector<16xf32>
      %45 = vector.shape_cast %44 : vector<16xf32> to vector<16x1xf32>
      %cst_29 = arith.constant 3.125000e-02 : f32
      %46 = vector.broadcast %cst_29 : f32 to vector<16x1xf32>
      %47 = arith.mulf %45, %46 : vector<16x1xf32>
      %cst_30 = arith.constant 9.99999996E-13 : f32
      %48 = vector.broadcast %cst_30 : f32 to vector<16x1xf32>
      %49 = arith.addf %47, %48 : vector<16x1xf32>
      %50 = math.rsqrt %49 : vector<16x1xf32>
      %51 = vector.broadcast %50 : vector<16x1xf32> to vector<16x128xf32>
      %52 = arith.mulf %42, %51 : vector<16x128xf32>
      %53 = vector.broadcast %34 : vector<1x128xf32> to vector<16x128xf32>
      %54 = arith.mulf %52, %53 : vector<16x128xf32>
      %55 = vector.broadcast %35 : vector<1x128xf32> to vector<16x128xf32>
      %56 = arith.addf %54, %55 : vector<16x128xf32>
      %57 = arith.addf %56, %26 : vector<16x128xf32>
      %c0_31 = arith.constant 0 : index
      %c0_32 = arith.constant 0 : index
      %58 = vector.load %arg9[%c0_31, %c0_32] : memref<1x128xf32, #tpu.memory_space<vmem>>, vector<1x128xf32>
      %c0_33 = arith.constant 0 : index
      %c0_34 = arith.constant 0 : index
      %59 = vector.load %arg10[%c0_33, %c0_34] : memref<1x128xf32, #tpu.memory_space<vmem>>, vector<1x128xf32>
      %cst_35 = arith.constant dense<0.000000e+00> : vector<16xf32>
      %60 = vector.multi_reduction <add>, %57, %cst_35 [1] : vector<16x128xf32> to vector<16xf32>
      %61 = vector.shape_cast %60 : vector<16xf32> to vector<16x1xf32>
      %cst_36 = arith.constant 3.125000e-02 : f32
      %62 = vector.broadcast %cst_36 : f32 to vector<16x1xf32>
      %63 = arith.mulf %61, %62 : vector<16x1xf32>
      %64 = vector.broadcast %63 : vector<16x1xf32> to vector<16x128xf32>
      %65 = arith.subf %57, %64 : vector<16x128xf32>
      %66 = arith.mulf %65, %32 : vector<16x128xf32>
      %67 = arith.mulf %66, %66 : vector<16x128xf32>
      %cst_37 = arith.constant dense<0.000000e+00> : vector<16xf32>
      %68 = vector.multi_reduction <add>, %67, %cst_37 [1] : vector<16x128xf32> to vector<16xf32>
      %69 = vector.shape_cast %68 : vector<16xf32> to vector<16x1xf32>
      %cst_38 = arith.constant 3.125000e-02 : f32
      %70 = vector.broadcast %cst_38 : f32 to vector<16x1xf32>
      %71 = arith.mulf %69, %70 : vector<16x1xf32>
      %cst_39 = arith.constant 9.99999997E-7 : f32
      %72 = vector.broadcast %cst_39 : f32 to vector<16x1xf32>
      %73 = arith.addf %71, %72 : vector<16x1xf32>
      %74 = math.rsqrt %73 : vector<16x1xf32>
      %75 = vector.broadcast %74 : vector<16x1xf32> to vector<16x128xf32>
      %76 = arith.mulf %66, %75 : vector<16x128xf32>
      %77 = vector.broadcast %58 : vector<1x128xf32> to vector<16x128xf32>
      %78 = arith.mulf %76, %77 : vector<16x128xf32>
      %79 = vector.broadcast %59 : vector<1x128xf32> to vector<16x128xf32>
      %80 = arith.addf %78, %79 : vector<16x128xf32>
      %c0_40 = arith.constant 0 : index
      %c0_41 = arith.constant 0 : index
      %81 = vector.load %arg11[%c0_40, %c0_41] : memref<16x128xf32, #tpu.memory_space<vmem>>, vector<16x128xf32>
      tpu.vector_store %arg11[%c0_40, %c0_41], %80 {strides = array<i32>} : memref<16x128xf32, #tpu.memory_space<vmem>>, vector<16x128xf32>,
    } else {
    }
    return
  }
  func.func @transform_0(%arg0: i32, %arg1: i32) -> (i32, i32) {
    %c0_i32 = arith.constant 0 : i32
    %c0_i32_0 = arith.constant 0 : i32
    return %arg0, %c0_i32 : i32, i32
  }
  func.func @transform_1(%arg0: i32, %arg1: i32) -> (i32, i32) {
    %c0_i32 = arith.constant 0 : i32
    %c0_i32_0 = arith.constant 0 : i32
    return %c0_i32, %arg1 : i32, i32
  }
  func.func @transform_2(%arg0: i32, %arg1: i32) -> (i32, i32) {
    %c0_i32 = arith.constant 0 : i32
    %c0_i32_0 = arith.constant 0 : i32
    return %c0_i32, %arg1 : i32, i32
  }
  func.func @transform_3(%arg0: i32, %arg1: i32) -> (i32, i32) {
    %c0_i32 = arith.constant 0 : i32
    %c0_i32_0 = arith.constant 0 : i32
    return %arg1, %c0_i32 : i32, i32
  }
  func.func @transform_4(%arg0: i32, %arg1: i32) -> (i32, i32) {
    %c0_i32 = arith.constant 0 : i32
    %c0_i32_0 = arith.constant 0 : i32
    %c0_i32_1 = arith.constant 0 : i32
    return %c0_i32, %c0_i32_0 : i32, i32
  }
  func.func @transform_5(%arg0: i32, %arg1: i32) -> (i32, i32) {
    %c0_i32 = arith.constant 0 : i32
    %c0_i32_0 = arith.constant 0 : i32
    %c0_i32_1 = arith.constant 0 : i32
    return %c0_i32, %c0_i32_0 : i32, i32
  }
  func.func @transform_6(%arg0: i32, %arg1: i32) -> (i32, i32) {
    %c0_i32 = arith.constant 0 : i32
    %c0_i32_0 = arith.constant 0 : i32
    %c0_i32_1 = arith.constant 0 : i32
    return %c0_i32, %c0_i32_0 : i32, i32
  }
  func.func @transform_7(%arg0: i32, %arg1: i32) -> (i32, i32) {
    %c0_i32 = arith.constant 0 : i32
    %c0_i32_0 = arith.constant 0 : i32
    %c0_i32_1 = arith.constant 0 : i32
    return %c0_i32, %c0_i32_0 : i32, i32
  }
  func.func @transform_8(%arg0: i32, %arg1: i32) -> (i32, i32) {
    %c0_i32 = arith.constant 0 : i32
    %c0_i32_0 = arith.constant 0 : i32
    %c0_i32_1 = arith.constant 0 : i32
    return %c0_i32, %c0_i32_0 : i32, i32
  }
  func.func @transform_9(%arg0: i32, %arg1: i32) -> (i32, i32) {
    %c0_i32 = arith.constant 0 : i32
    %c0_i32_0 = arith.constant 0 : i32
    return %arg0, %c0_i32 : i32, i32
  }
}

</mosaic_0001>

<bundles_post_ra>
// kernel: tpu_custom_call.1
= control target key start
LH: loop header
LB: loop body
LE: loop exit
PB: predicated region body
PF: predicated region fallthrough
CT: control target
= control target key end

     0   :  { %14 = vsyncpa [#allocation5], 0  ;;  %s827_s0 = inlined_call_operand.hbm [shape: f32[16,128], index: 0, kind: input, shape index: {}]   ;;  %s828_s1 = inlined_call_operand.hbm [shape: bf16[128,128], index: 1, kind: input, shape index: {}]   ;;  %s829_s2 = inlined_call_operand.vmem [shape: f32[1,128], index: 2, kind: input, shape index: {}]   ;;  %s830_s3 = inlined_call_operand.hbm [shape: bf16[128,128], index: 3, kind: input, shape index: {}]   ;;  %s831_s4 = inlined_call_operand.vmem [shape: f32[1,128], index: 4, kind: input, shape index: {}]   ;;  %s832_s5 = inlined_call_operand.vmem [shape: f32[1,128], index: 5, kind: input, shape index: {}]   ;;  %s833_s6 = inlined_call_operand.vmem [shape: f32[1,128], index: 6, kind: input, shape index: {}]   ;;  %s834_s7 = inlined_call_operand.vmem [shape: f32[1,128], index: 7, kind: input, shape index: {}]   ;;  %s835_s8 = inlined_call_operand.vmem [shape: f32[1,128], index: 8, kind: input, shape index: {}]   ;;  %s836_s9 = inlined_call_operand.hbm [shape: f32[16,128], index: 9, kind: output, shape index: {}]  }
   0x1   :  { %15 = vsyncpa [#allocation8], 0 }
   0x2   :  { %16 = vsyncpa [#allocation6], 0  ;;  %s660_s30 = smov [#allocation7]   ;;  %s566_s13 = scalar_lea.hbm %s828_s1, 1024 }
   0x3   :  { %s34_s10 = sshll.u32 %s660_s30, 4  ;;  %p567_p0 = scmp.ne.s32.totalorder %s828_s1, %s566_s13  ;;  %s35_s10 = int_to_ptr.vmem [resolvable:$true] %s34_s10 }
   0x4   :  { %p570_p1 = scmp.lt.u32.totalorder %s566_s13, %s828_s1 }
   0x6   :  { %p572_p2 = pnand %p570_p1, %p567_p0 }
   0x8   :  { %575 = shalt.err (!%p572_p2)
}
   0x9   :  { %s576_s18 = scalar_lea.vmem %s35_s10, 1024  ;;  %p581_p4 = scmp.lt.s32.totalorder %s35_s10, %s35_s10 }
   0xa   :  { %p577_p3 = scmp.ne.s32.totalorder %s35_s10, %s576_s18  ;;  %p582_p5 = scmp.lt.s32.totalorder %s576_s18, %s576_s18 }
   0xc   :  { %p583_p6 = por %p582_p5, %p581_p4 }
   0xe   :  { %p584_p7 = pnand %p583_p6, %p577_p3 }
  0x10   :  { %587 = shalt.err (!%p584_p7)
}
  0x11   :  { %s661_s19 = smov 64   ;;  %s662_s20 = smov 4  }
  0x12   :  { %40 = dma.hbm_to_vmem [thread:$0]  %s828_s1, 1024, %s35_s10, [#allocation8], %s661_s19, %s661_s19, %s662_s20  }
  0x13   :  { %s663_s23 = smov [#allocation4]   ;;  %s588_s27 = scalar_lea.hbm %s827_s0, 256 }
  0x14   :  { %s22_s24 = sshll.u32 %s663_s23, 4  ;;  %p589_p8 = scmp.ne.s32.totalorder %s827_s0, %s588_s27  ;;  %s23_s24 = int_to_ptr.vmem [resolvable:$true] %s22_s24 }
  0x15   :  { %p592_p9 = scmp.lt.u32.totalorder %s588_s27, %s827_s0 }
  0x17   :  { %p594_p10 = pnand %p592_p9, %p589_p8 }
  0x19   :  { %597 = shalt.err (!%p594_p10)
}
  0x1a   :  { %s598_s12 = scalar_lea.vmem %s23_s24, 256  ;;  %p603_p12 = scmp.lt.s32.totalorder %s23_s24, %s23_s24 }
  0x1b   :  { %p599_p11 = scmp.ne.s32.totalorder %s23_s24, %s598_s12  ;;  %p604_p13 = scmp.lt.s32.totalorder %s598_s12, %s598_s12 }
  0x1d   :  { %p605_p0 = por %p604_p13, %p603_p12 }
  0x1f   :  { %p606_p1 = pnand %p605_p0, %p599_p11 }
  0x21   :  { %609 = shalt.err (!%p606_p1)
}
  0x22   :  { %s664_s1 = smov 128   ;;  %s665_s10 = smov 8  }
  0x23   :  { %28 = dma.hbm_to_vmem [thread:$0]  %s827_s0, 256, %s23_s24, [#allocation5], %s664_s1, %s664_s1, %s665_s10  }
  0x24   :  { %s666_s15 = smov [#allocation9]   ;;  %s610_s21 = scalar_lea.hbm %s830_s3, 1024 }
  0x25   :  { %s48_s16 = sshll.u32 %s666_s15, 4  ;;  %p611_p2 = scmp.ne.s32.totalorder %s830_s3, %s610_s21  ;;  %s49_s16 = int_to_ptr.vmem [resolvable:$true] %s48_s16 }
  0x26   :  { %p614_p3 = scmp.lt.u32.totalorder %s610_s21, %s830_s3 }
  0x28   :  { %p616_p4 = pnand %p614_p3, %p611_p2 }
  0x2a   :  { %619 = shalt.err (!%p616_p4)
}
  0x2b   :  { %s620_s27 = scalar_lea.vmem %s49_s16, 1024  ;;  %p625_p6 = scmp.lt.s32.totalorder %s49_s16, %s49_s16 }
  0x2c   :  { %p621_p5 = scmp.ne.s32.totalorder %s49_s16, %s620_s27  ;;  %p626_p7 = scmp.lt.s32.totalorder %s620_s27, %s620_s27 }
  0x2e   :  { %p627_p8 = por %p626_p7, %p625_p6 }
  0x30   :  { %p628_p9 = pnand %p627_p8, %p621_p5 }
  0x32   :  { %631 = shalt.err (!%p628_p9)
}
  0x33   :  { %54 = dma.hbm_to_vmem [thread:$0]  %s830_s3, 1024, %s49_s16, [#allocation8], %s661_s19, %s661_s19, %s662_s20  }
  0x34   :  { %654 = dma.done.wait [#allocation5], 256  }
  0x35   :  { %655 = vsyncadd [#allocation5], 4294967040 }
  0x36   :  { %656 = dma.done.wait [#allocation8], 2048  }
  0x37   :  { %657 = vsyncadd [#allocation8], 4294965248  ;;  %v667_v0 = vmov 0.0   ;;  %vm668_vm0 = vmmov 0   ;;  %v538_v1 = vld [vmem:[#allocation7] sm:$0xff]   ;;  %v539_v2 = vld [vmem:[#allocation7 + $0x8] sm:$0xff]   ;;  %v334_v47 = vlaneseq }
  0x38   :  { %488 = vmatprep.subr.bf16.mxu0 %v667_v0  ;;  %504 = vmatprep.mubr.msk.bf16.mxu0 %vm668_vm0, %v667_v0  ;;  %v540_v3 = vld [vmem:[#allocation7 + $0x10] sm:$0xff]   ;;  %v546_v4 = vld [vmem:[#allocation9] sm:$0xff]   ;;  %v541_v5 = vld [vmem:[#allocation7 + $0x18] sm:$0xff]   ;;  %s669_s13 = smov [#allocation10]  }
  0x39   :  { %508 = vmatprep.subr.bf16.mxu1 %v667_v0  ;;  %524 = vmatprep.mubr.msk.bf16.mxu1 %vm668_vm0, %v667_v0  ;;  %v547_v6 = vld [vmem:[#allocation9 + $0x8] sm:$0xff]   ;;  %v542_v7 = vld [vmem:[#allocation7 + $0x20] sm:$0xff]   ;;  %v544_v9 = vld [vmem:[#allocation7 + $0x30] sm:$0xff]   ;;  %v335_v48 = vand.u32 127, %v334_v47  ;;  %s434_s14 = sshll.u32 %s669_s13, 4  ;;  %s435_s14 = int_to_ptr.vmem [resolvable:$true] %s434_s14 }
  0x3a   :  { %489 = vmatpush3.bf16.msra.mxu0 %v538_v1  ;;  %509 = vmatpush3.bf16.msra.mxu1 %v546_v4  ;;  %v543_v8 = vld [vmem:[#allocation7 + $0x28] sm:$0xff]   ;;  %v545_v10 = vld [vmem:[#allocation7 + $0x38] sm:$0xff]   ;;  %v777_v11 = vld [vmem:[#allocation4] sm:$0xff]  ;;  %s632_s15 = scalar_lea.vmem %s435_s14, 256  ;;  %p637_p11 = scmp.lt.s32.totalorder %s435_s14, %s435_s14 }
  0x3b   :  { %490 = vmatprep.subr.bf16.mxu0 %v667_v0  ;;  %510 = vmatprep.subr.bf16.mxu1 %v667_v0  ;;  %v779_v12 = vld [vmem:[#allocation4 + $0x8] sm:$0xff]  ;;  %v548_v14 = vld [vmem:[#allocation9 + $0x10] sm:$0xff]   ;;  %v550_v16 = vld [vmem:[#allocation9 + $0x20] sm:$0xff]   ;;  %vm336_vm1 = vcmp.lt.s32.totalorder %v335_v48, 32  ;;  %p633_p10 = scmp.ne.s32.totalorder %s435_s14, %s632_s15  ;;  %p638_p12 = scmp.lt.s32.totalorder %s632_s15, %s632_s15 }
  0x3c   :  { %v90_v13 = vpack.c.bf16 %v779_v12, %v777_v11  ;;  %v549_v15 = vld [vmem:[#allocation9 + $0x18] sm:$0xff]   ;;  %v551_v17 = vld [vmem:[#allocation9 + $0x28] sm:$0xff]   ;;  %v552_v18 = vld [vmem:[#allocation9 + $0x30] sm:$0xff]   ;;  %v465_v51 = vsel %vm336_vm1, 1.0, %v667_v0 }
  0x3d   :  { %v553_v19 = vld [vmem:[#allocation9 + $0x38] sm:$0xff]   ;;  %v448_v20 = vld [vmem:[%s829_s2] ss:$0 sm:$0xff]  ;;  %p639_p13 = por %p638_p12, %p637_p11 }
  0x3e   :  { %491 = vmatpush3.bf16.msra.mxu0 %v539_v2  ;;  %511 = vmatpush3.bf16.msra.mxu1 %v547_v6  ;;  %v447_v38 = vld [vmem:[%s831_s4] ss:$0 sm:$0xff] }
  0x3f   :  { %492 = vmatprep.subr.bf16.mxu0 %v667_v0  ;;  %512 = vmatprep.subr.bf16.mxu1 %v667_v0  ;;  %p640_p0 = pnand %p639_p13, %p633_p10 }
  0x42   :  { %493 = vmatpush3.bf16.msra.mxu0 %v540_v3  ;;  %513 = vmatpush3.bf16.msra.mxu1 %v548_v14 }
  0x43   :  { %494 = vmatprep.subr.bf16.mxu0 %v667_v0  ;;  %514 = vmatprep.subr.bf16.mxu1 %v667_v0 }
  0x46   :  { %495 = vmatpush3.bf16.msra.mxu0 %v541_v5  ;;  %515 = vmatpush3.bf16.msra.mxu1 %v549_v15  ;;  %v467_v5 = vld [vmem:[%s833_s6] ss:$0 sm:$0xff] }
  0x47   :  { %496 = vmatprep.subr.bf16.mxu0 %v667_v0  ;;  %516 = vmatprep.subr.bf16.mxu1 %v667_v0 }
  0x4a   :  { %497 = vmatpush3.bf16.msra.mxu0 %v542_v7  ;;  %517 = vmatpush3.bf16.msra.mxu1 %v550_v16 }
  0x4b   :  { %498 = vmatprep.subr.bf16.mxu0 %v667_v0  ;;  %518 = vmatprep.subr.bf16.mxu1 %v667_v0 }
  0x4e   :  { %499 = vmatpush3.bf16.msra.mxu0 %v543_v8  ;;  %519 = vmatpush3.bf16.msra.mxu1 %v551_v17 }
  0x4f   :  { %500 = vmatprep.subr.bf16.mxu0 %v667_v0  ;;  %520 = vmatprep.subr.bf16.mxu1 %v667_v0 }
  0x52   :  { %501 = vmatpush3.bf16.msra.mxu0 %v544_v9  ;;  %521 = vmatpush3.bf16.msra.mxu1 %v552_v18 }
  0x53   :  { %502 = vmatprep.subr.bf16.mxu0 %v667_v0  ;;  %522 = vmatprep.subr.bf16.mxu1 %v667_v0  ;;  %v466_v0 = vld [vmem:[%s832_s5] ss:$0 sm:$0xff] }
  0x56   :  { %503 = vmatpush3.bf16.msra.mxu0 %v545_v10  ;;  %523 = vmatpush3.bf16.msra.mxu1 %v553_v19 }
  0x59   :  { %505 = vmatmul.mubr.bf16.vlgmr.msra.gmra.mrb[0].mxu0 %v90_v13 }
 0x12c   :  { %v198_v21 = vpop.f32.mrb[0].mxu0 }
 0x12d   :  { %v199_v22 = vadd.f32 %v448_v20, %v198_v21  ;;  %v506_v23 = vpop.f32.mrb[1].mxu0 }
 0x12e   :  { %v201_v24 = vpop.f32.mrb[2].mxu0 }
 0x12f   :  { %v205_v25 = vmul.f32 0.70710677, %v199_v22  ;;  %v202_v26 = vadd.f32 %v448_v20, %v201_v24  ;;  %v507_v27 = vpop.f32.mrb[3].mxu0 }
 0x131   :  { %554 = verf.f32 %v205_v25  ;;  %v206_v28 = vmul.f32 0.70710677, %v202_v26 }
 0x133   :  { %556 = verf.f32 %v206_v28 }
 0x13b   :  { %v555_v29 = vpop.eup %554 }
 0x13c   :  { %v209_v30 = vadd.f32 1.0, %v555_v29 }
 0x13d   :  { %v557_v31 = vpop.eup %556 }
 0x13e   :  { %v211_v32 = vmul.f32 0.5, %v209_v30  ;;  %v210_v33 = vadd.f32 1.0, %v557_v31  ;;  %v468_v31 = vld [vmem:[%s834_s7] ss:$0 sm:$0xff] }
 0x140   :  { %v212_v34 = vmul.f32 0.5, %v210_v33  ;;  %v213_v35 = vmul.f32 %v211_v32, %v199_v22  ;;  %v469_v33 = vld [vmem:[%s835_s8] ss:$0 sm:$0xff] }
 0x142   :  { %v214_v36 = vmul.f32 %v212_v34, %v202_v26 }
 0x144   :  { %v217_v37 = vpack.c.bf16 %v214_v36, %v213_v35 }
 0x146   :  { %525 = vmatmul.mubr.bf16.vlgmr.msra.gmra.mrb[0].mxu1 %v217_v37 }
 0x219   :  { %v316_v39 = vpop.f32.mrb[0].mxu1 }
 0x21a   :  { %v323_v40 = vadd.f32 %v447_v38, %v316_v39  ;;  %v526_v41 = vpop.f32.mrb[1].mxu1 }
 0x21b   :  { %v319_v42 = vpop.f32.mrb[2].mxu1 }
 0x21c   :  { %v324_v43 = vadd.f32 %v447_v38, %v319_v42  ;;  %v527_v44 = vpop.f32.mrb[3].mxu1  ;;  %v339_v45 = vadd.f32 %v323_v40, %v777_v11 }
 0x21e   :  { %343 = vadd.xlane.f32.xlu0 %v339_v45  ;;  %v340_v46 = vadd.f32 %v324_v43, %v779_v12 }
 0x222   :  { %345 = vadd.xlane.f32.xlu0 %v340_v46 }
 0x2ab   :  { %v344_v49 = vpop.xlane.xlu0 %343 }
 0x2ac   :  { %v347_v50 = vmul.f32 0.03125, %v344_v49 }
 0x2ae   :  { %v349_v52 = vsub.f32 %v339_v45, %v347_v50 }
 0x2af   :  { %v346_v53 = vpop.xlane.xlu0 %345 }
 0x2b0   :  { %v348_v54 = vmul.f32 0.03125, %v346_v53  ;;  %v351_v55 = vmul.f32 %v465_v51, %v349_v52 }
 0x2b2   :  { %v350_v56 = vsub.f32 %v340_v46, %v348_v54  ;;  %v353_v57 = vmul.f32 %v351_v55, %v351_v55 }
 0x2b4   :  { %355 = vadd.xlane.f32.xlu1 %v353_v57  ;;  %v352_v58 = vmul.f32 %v465_v51, %v350_v56 }
 0x2b6   :  { %v354_v59 = vmul.f32 %v352_v58, %v352_v58 }
 0x2b8   :  { %357 = vadd.xlane.f32.xlu1 %v354_v59 }
 0x341   :  { %v356_v60 = vpop.xlane.xlu1 %355 }
 0x342   :  { %v359_v61 = vmul.f32 0.03125, %v356_v60 }
 0x344   :  { %v361_v62 = vadd.f32 1e-12, %v359_v61 }
 0x345   :  { %v358_v63 = vpop.xlane.xlu1 %357 }
 0x346   :  { %558 = vrsqrt.f32 %v361_v62  ;;  %v360_v1 = vmul.f32 0.03125, %v358_v63 }
 0x348   :  { %v362_v2 = vadd.f32 1e-12, %v360_v1 }
 0x34a   :  { %560 = vrsqrt.f32 %v362_v2 }
 0x350   :  { %v559_v3 = vpop.eup %558 }
 0x351   :  { %v365_v4 = vmul.f32 %v559_v3, %v351_v55 }
 0x353   :  { %v373_v6 = vmul.f32 %v466_v0, %v365_v4 }
 0x354   :  { %v561_v7 = vpop.eup %560 }
 0x355   :  { %v381_v8 = vadd.f32 %v467_v5, %v373_v6  ;;  %v366_v9 = vmul.f32 %v561_v7, %v352_v58 }
 0x357   :  { %v383_v10 = vadd.f32 %v381_v8, %v777_v11  ;;  %v374_v13 = vmul.f32 %v466_v0, %v366_v9 }
 0x359   :  { %387 = vadd.xlane.f32.xlu0 %v383_v10  ;;  %v382_v14 = vadd.f32 %v467_v5, %v374_v13 }
 0x35b   :  { %v384_v15 = vadd.f32 %v382_v14, %v779_v12 }
 0x35d   :  { %389 = vadd.xlane.f32.xlu1 %v384_v15 }
 0x3e6   :  { %v388_v16 = vpop.xlane.xlu0 %387 }
 0x3e7   :  { %v391_v17 = vmul.f32 0.03125, %v388_v16 }
 0x3e9   :  { %v393_v18 = vsub.f32 %v383_v10, %v391_v17 }
 0x3ea   :  { %v390_v19 = vpop.xlane.xlu1 %389 }
 0x3eb   :  { %v392_v20 = vmul.f32 0.03125, %v390_v19  ;;  %v395_v21 = vmul.f32 %v465_v51, %v393_v18 }
 0x3ed   :  { %v394_v22 = vsub.f32 %v384_v15, %v392_v20  ;;  %v397_v23 = vmul.f32 %v395_v21, %v395_v21 }
 0x3ef   :  { %399 = vadd.xlane.f32.xlu0 %v397_v23  ;;  %v396_v24 = vmul.f32 %v465_v51, %v394_v22 }
 0x3f1   :  { %v398_v25 = vmul.f32 %v396_v24, %v396_v24 }
 0x3f3   :  { %401 = vadd.xlane.f32.xlu1 %v398_v25 }
 0x47c   :  { %v400_v26 = vpop.xlane.xlu0 %399 }
 0x47d   :  { %v403_v11 = vmul.f32 0.03125, %v400_v26 }
 0x47f   :  { %v405_v27 = vadd.f32 1e-06, %v403_v11 }
 0x480   :  { %v402_v28 = vpop.xlane.xlu1 %401 }
 0x481   :  { %562 = vrsqrt.f32 %v405_v27  ;;  %v404_v29 = vmul.f32 0.03125, %v402_v28 }
 0x483   :  { %v406_v12 = vadd.f32 1e-06, %v404_v29 }
 0x485   :  { %564 = vrsqrt.f32 %v406_v12 }
 0x48b   :  { %v563_v30 = vpop.eup %562 }
 0x48c   :  { %v409_v32 = vmul.f32 %v563_v30, %v395_v21 }
 0x48e   :  { %v417_v34 = vmul.f32 %v468_v31, %v409_v32 }
 0x48f   :  { %v565_v35 = vpop.eup %564 }
 0x490   :  { %v410_v36 = vmul.f32 %v565_v35, %v396_v24  ;;  %v425_v37 = vadd.f32 %v469_v33, %v417_v34 }
 0x492   :  { %v418_v38 = vmul.f32 %v468_v31, %v410_v36  ;;  %427 = vst [vmem:[#allocation10] sm:$0xff] %v425_v37 }
 0x494   :  { %v426_v39 = vadd.f32 %v469_v33, %v418_v38 }
 0x496   :  { %428 = vst [vmem:[#allocation10 + $0x8] sm:$0xff] %v426_v39 }
 0x497   :  { %643 = shalt.err (!%p640_p0)
}
 0x498   :  { %s644_s16 = scalar_lea.hbm %s836_s9, 256 }
 0x499   :  { %p645_p1 = scmp.ne.s32.totalorder %s836_s9, %s644_s16  ;;  %p648_p2 = scmp.lt.u32.totalorder %s644_s16, %s836_s9 }
 0x49b   :  { %p650_p3 = pnand %p648_p2, %p645_p1 }
 0x49d   :  { %653 = shalt.err (!%p650_p3)
}
 0x49e   :  { %440 = dma.vmem_to_hbm [thread:$0]  %s435_s14, 256, %s836_s9, [#allocation6], %s664_s1, %s664_s1, %s665_s10  }
 0x49f   :  { %658 = dma.done.wait [#allocation6], 256  }
 0x4a0   :  { %659 = vsyncadd [#allocation6], 4294967040 }
 0x4a1   :  { %444 = vsyncpa [#allocation5], 1 }
 0x4a2   :  { %445 = vsyncpa [#allocation8], 1 }
 0x4a3   :  { %446 = vsyncpa [#allocation6], 1 }

</bundles_post_ra>
